<compile_context>
chip_gen: v6e
topology: v6e:2x2x1
jax: 0.10.0
libtpu: 0.0.40
codegen_flags: <defaults>
</compile_context>

<pallas_src>
import functools

import jax
import jax.numpy as jnp
from jax import lax
from jax.experimental import pallas as pl
from jax.experimental.pallas import tpu as pltpu


def _round_up(a, b):
    return (a + b - 1) // b * b


def _cdiv(a, b):
    return (a + b - 1) // b


@functools.lru_cache(maxsize=None)
def _chip_info():
    """Generation-aware tiling / VMEM budgets (v5e / v6e / v7x)."""
    kind = ""
    try:
        kind = jax.devices()[0].device_kind.lower()
    except Exception:
        pass
    is_v7 = "v7" in kind
    is_v5e = ("v5e" in kind) or ("v5 lite" in kind) or ("v5litepod" in kind)

    vmem_cap = None
    try:
        vmem_cap = int(pltpu.get_tpu_info().vmem_capacity_bytes)
    except Exception:
        pass
    if vmem_cap is None:
        if is_v7:
            vmem_cap = 64 << 20
        elif ("v5" in kind) or ("v6" in kind):
            vmem_cap = 128 << 20
        else:
            vmem_cap = 64 << 20          # unknown chip: conservative

    # Ask for ~78% of physical VMEM (capped at 100 MiB) so the compiler keeps
    # headroom for internal scratch; block budget is ~60% of that.
    #   v5e/v6e (128 MiB): limit 100 MiB, budget ~60 MiB
    #   v7x      (64 MiB): limit  ~50 MiB, budget ~30 MiB
    vmem_limit = min(100 << 20, int(vmem_cap * 0.78))
    block_budget = int(vmem_limit * 0.6)

    tm_default = 128 if is_v5e else 256
    mxu_tile = 128 if is_v5e else 256
    # v7x has 2 TensorCores sharing the grid: keep >= 2 steps per core so the
    # output writeback DMA overlaps compute.
    min_grid_steps = 4 if is_v7 else 2
    return vmem_limit, block_budget, tm_default, mxu_tile, min_grid_steps


def _make_kernel(similarity: str, eps: float, m_valid: int, m_pad: int,
                 d_valid: int, tm: int):
    needs_mask = (m_valid != m_pad)
    negate = similarity in ("l2", "l1")   # kernel computes a distance `val`

    def kernel(scal_ref, x_ref, xn_ref, y2_ref, o_ref):
        xd = x_ref[...]                       # native dtype -> MXU feed
        x = xd.astype(jnp.float32)            # f32 for VPU / EUP epilogue

        # ---- similarity / distance matrix (specialized at trace time) ----
        if similarity == "l2":
            # xn_ref holds (2 * x_n)^T -> xy2 == 2 * x @ x_n^T in one MXU pass.
            xy2 = jnp.dot(xd, xn_ref[...], preferred_element_type=jnp.float32)
            x2 = jnp.sum(x * x, axis=1, keepdims=True)
            y2 = y2_ref[...]                                    # (1, Mp) f32
            val = jnp.sqrt(jnp.maximum(x2 + y2 - xy2, 0.0))     # distance
        elif similarity == "dot":
            # 1/D folded into xn in the wrapper.
            val = jnp.dot(xd, xn_ref[...], preferred_element_type=jnp.float32)
        elif similarity == "cos":
            # x_n pre-normalized in the wrapper; normalize the x tile (rsqrt->EUP).
            ss = jnp.maximum(jnp.sum(x * x, axis=1, keepdims=True), 1e-24)
            xq = (x * lax.rsqrt(ss)).astype(xd.dtype)
            val = jnp.dot(xq, xn_ref[...], preferred_element_type=jnp.float32)
        elif similarity == "l1":
            # xn_ref is (Dp, Mp); accumulate |x - xn| into a (tm, 128) f32
            # block per 128 neighbors -- no (tm, 128, Dp) intermediates, cast
            # only the (Dp, 128) slice once per neighbor block.
            # TODO(synk): for very large D switch to lax.fori_loop / an extra
            # grid axis instead of the unrolled Python loop over D.
            blocks = []
            for j in range(m_pad // 128):
                ncj = xn_ref[:, j * 128:(j + 1) * 128].astype(jnp.float32)
                acc = jnp.zeros((tm, 128), jnp.float32)
                for d in range(d_valid):
                    acc = acc + jnp.abs(x[:, d:d + 1] - ncj[d:d + 1, :])
                blocks.append(acc)
            val = blocks[0] if len(blocks) == 1 else jnp.concatenate(blocks, axis=1)
        else:
            raise ValueError(f"unknown similarity: {similarity}")

        # ---- row-wise min/max (padded columns replaced by a valid column) ----
        if needs_mask:
            col = lax.broadcasted_iota(jnp.int32, (1, m_pad), 1)
            masked = jnp.where(col < m_valid, val, val[:, :1])
        else:
            masked = val
        vmin = jnp.min(masked, axis=1, keepdims=True)
        vmax = jnp.max(masked, axis=1, keepdims=True)

        # (tm, 1) reciprocal is negligible; kept exact to match the reference.
        inv_den = 1.0 / (vmax - vmin)
        if negate:   # sim = -val: (sim - smin) = (vmax - val), (smax - smin) = (vmax - vmin)
            sim_norm = jnp.maximum((vmax - val) * inv_den, eps)
        else:
            sim_norm = jnp.maximum((val - vmin) * inv_den, eps)

        # ---- soft-KNN mask; scalars precomputed on the host, read from SMEM ----
        coef = scal_ref[0]        # sigmoid(p0) / (1 - sigmoid(p0))
        k = scal_ref[1]           # sigmoid(p1)
        log_k = scal_ref[2]       # log(k)
        shift = jnp.where(sim_norm <= k,
                          coef * (k - sim_norm) * (jnp.log(sim_norm) - log_k),
                          0.0)

        out = shift - val if negate else val + shift
        o_ref[...] = out.astype(o_ref.dtype)

    return kernel


@functools.partial(jax.jit, static_argnames=("similarity", "eps", "tm"))
def soft_knn_mask(x, x_n, params, similarity="l2", eps=1e-12, tm=None):
    """Pallas implementation of SoftKNNMask.forward(x, x_n, similarity)."""
    N, D = x.shape
    M, D2 = x_n.shape
    assert D == D2

    vmem_limit, block_budget, tm_default, mxu_tile, min_steps = _chip_info()

    d_pad = _round_up(D, 128)
    m_pad = _round_up(M, 128)
    # Align the trailing MXU tile to 256 on v6e/v7x when the matmul actually
    # matters (large D) and M is big enough that the extra padding is modest.
    if similarity != "l1" and mxu_tile == 256 and d_pad >= 256 and M > 128 and m_pad % 256:
        m_pad = _round_up(M, 256)

    out_dtype = x.dtype                       # bf16 in -> bf16 out (torch-like)
    x_item = jnp.dtype(x.dtype).itemsize
    xn_item = jnp.dtype(x_n.dtype).itemsize
    out_item = jnp.dtype(out_dtype).itemsize

    # ---- static row-tile selection ----
    if tm is None:
        tm = tm_default
    if similarity == "l1":
        tm = min(tm, 128)         # keep the (tm, 128) f32 accumulator in vregs
    # Ensure at least `min_steps` grid steps (>= 2 per v7x TensorCore) when N allows.
    cap = _round_up(max(_cdiv(N, min_steps), 8), 8)
    tm = max(8, min(_round_up(tm, 8), cap))

    def _blocks_bytes(t):
        return (2 * t * d_pad * x_item          # x tile (double-buffered)
                + 1 * d_pad * m_pad * xn_item   # resident x_n (single-buffered)
                + 1 * m_pad * 4                 # resident sum(x_n^2)
                + 2 * t * m_pad * out_item)     # output tile (double-buffered)

    while tm > 8 and _blocks_bytes(tm) > block_budget:
        tm = max(8, _round_up(tm // 2, 8))
    # TODO(synk): if x_n alone exceeds the VMEM budget (very large M*D), add an
    # "arbitrary" M grid axis with a two-pass running-min/max scheme.

    n_pad = _round_up(N, tm)

    # ---- one-time wrapper-side preprocessing (hoisted out of the grid loop) ----
    xp = jnp.zeros((n_pad, d_pad), x.dtype).at[:N, :D].set(x)

    xn_f32 = x_n.astype(jnp.float32)
    if similarity == "cos":
        inv_n = lax.rsqrt(jnp.maximum(
            jnp.sum(xn_f32 * xn_f32, axis=1, keepdims=True), 1e-24))
        xn_use = (xn_f32 * inv_n).astype(x_n.dtype)
    elif similarity == "dot":
        xn_use = (xn_f32 * (1.0 / D)).astype(x_n.dtype)   # fold 1/D scale
    elif similarity == "l2":
        xn_use = (xn_f32 * 2.0).astype(x_n.dtype)         # fold factor 2 (exact)
    else:
        xn_use = x_n

    # x_n pre-transposed to (D, M) so the MXU consumes it directly; the l1
    # branch also uses this layout (per-d row slices broadcast over sublanes).
    xn_op = jnp.zeros((d_pad, m_pad), x_n.dtype).at[:D, :M].set(xn_use.T)
    y2 = jnp.zeros((1, m_pad), jnp.float32).at[:, :M].set(
        jnp.sum(xn_f32 * xn_f32, axis=1)[None, :])

    p = params.astype(jnp.float32)
    s = jax.nn.sigmoid(p[0])
    k = jax.nn.sigmoid(p[1])
    scal = jnp.stack([s / (1.0 - s), k, jnp.log(k)])      # (3,) f32 -> SMEM

    kernel = _make_kernel(similarity, float(eps), M, m_pad, D, tm)

    def _resident(block_shape):
        # Loop-invariant operands (constant index map): single-buffer them so
        # the dominant x_n block only occupies VMEM once.
        try:
            return pl.BlockSpec(block_shape, lambda i: (0, 0),
                                pipeline_mode=pl.Buffered(buffer_count=1))
        except Exception:
            return pl.BlockSpec(block_shape, lambda i: (0, 0))

    grid_spec = pltpu.PrefetchScalarGridSpec(
        num_scalar_prefetch=0,
        grid=(n_pad // tm,),
        in_specs=[
            pl.BlockSpec(memory_space=pltpu.MemorySpace.SMEM),   # 3 scalars
            pl.BlockSpec((tm, d_pad), lambda i: (i, 0)),         # x row tile
            _resident((d_pad, m_pad)),                           # resident x_n
            _resident((1, m_pad)),                               # resident sum(x_n^2)
        ],
        out_specs=pl.BlockSpec((tm, m_pad), lambda i: (i, 0)),
    )

    out = pl.pallas_call(
        kernel,
        out_shape=jax.ShapeDtypeStruct((n_pad, m_pad), out_dtype),
        grid_spec=grid_spec,
        compiler_params=pltpu.CompilerParams(
            dimension_semantics=("parallel",),
            vmem_limit_bytes=vmem_limit),
    )(scal, xp, xn_op, y2)

    return out[:N, :M]


def _reference(x, x_n, params, similarity, eps=1e-12):
    """Plain-JAX reference mirroring the PyTorch module."""
    D = x.shape[1]
    if similarity == "l2":
        d2 = jnp.maximum(
            jnp.sum(x * x, 1, keepdims=True)
            + jnp.sum(x_n * x_n, 1)[None, :]
            - 2.0 * x @ x_n.T, 0.0)
        sim = -jnp.sqrt(d2)
    elif similarity == "l1":
        sim = -jnp.sum(jnp.abs(x[:, None, :] - x_n[None, :, :]), -1)
    elif similarity == "dot":
        sim = x @ x_n.T / D
    elif similarity == "cos":
        xn_ = x / jnp.maximum(jnp.linalg.norm(x, axis=1, keepdims=True), 1e-12)
        yn_ = x_n / jnp.maximum(jnp.linalg.norm(x_n, axis=1, keepdims=True), 1e-12)
        sim = xn_ @ yn_.T
    smin = sim.min(axis=1, keepdims=True)
    smax = sim.max(axis=1, keepdims=True)
    sim_norm = jnp.maximum((sim - smin) / (smax - smin), eps)
    s, k = jax.nn.sigmoid(params)
    sim_mask = s / (1 - s) * (k - sim_norm) * jnp.log(sim_norm / k)
    return sim + jnp.where(sim_norm <= k, sim_mask, 0.0)


if __name__ == "__main__":
    key = jax.random.PRNGKey(0)
    kx, kn, kp = jax.random.split(key, 3)

    N, M, D = 16, 8, 32
    x = jax.random.normal(kx, (N, D), dtype=jnp.float32)
    x_n = jax.random.normal(kn, (M, D), dtype=jnp.float32)
    # nn.Parameter(torch.normal(0, 1, (2,))) -> deterministic synthetic init
    params = jax.random.normal(kp, (2,), dtype=jnp.float32)

    ok = True
    for sim_kind in ("l2", "l1", "dot", "cos"):
        out = soft_knn_mask(x, x_n, params, similarity=sim_kind)
        out = jax.block_until_ready(out)
        ref = _reference(x, x_n, params, sim_kind)
        if not jnp.allclose(out, ref, atol=1e-4, rtol=1e-4):
            ok = False
            print(f"MISMATCH for similarity={sim_kind}")

    # bf16-in / bf16-out smoke run (exercise the dtype-following output path).
    out_bf16 = jax.block_until_ready(
        soft_knn_mask(x.astype(jnp.bfloat16), x_n.astype(jnp.bfloat16),
                      params, similarity="l2"))
    if out_bf16.dtype != jnp.bfloat16:
        ok = False
        print("bf16 output dtype mismatch")

    if ok:
        print("KERNEL_OK")
</pallas_src>

<mosaic_0001>
module attributes {stable_mosaic.version = 11 : i64} {
  func.func @kernel(%arg0: i32, %arg1: memref<3xf32, #tpu.memory_space<smem>>, %arg2: memref<8x128xf32, #tpu.memory_space<vmem>>, %arg3: memref<128x128xf32, #tpu.memory_space<vmem>>, %arg4: memref<1x128xf32, #tpu.memory_space<vmem>>, %arg5: memref<8x128xf32, #tpu.memory_space<vmem>>) attributes {dimension_semantics = [#tpu.dimension_semantics<parallel>], iteration_bounds = array<i64: 2>, scalar_prefetch = 0 : i64, scratch_operands = 0 : i64, tpu.core_type = #tpu.core_type<tc>, window_params = [{transform_indices = @transform_0, window_bounds = array<i64: 3>}, {transform_indices = @transform_1, window_bounds = array<i64: 8, 128>}, {pipeline_mode = #tpu.pipeline_mode<synchronous>, transform_indices = @transform_2, window_bounds = array<i64: 128, 128>}, {pipeline_mode = #tpu.pipeline_mode<synchronous>, transform_indices = @transform_3, window_bounds = array<i64: 1, 128>}, {transform_indices = @transform_4, window_bounds = array<i64: 8, 128>}]} {
    %c0 = arith.constant 0 : index
    %c0_0 = arith.constant 0 : index
    %0 = vector.load %arg2[%c0, %c0_0] : memref<8x128xf32, #tpu.memory_space<vmem>>, vector<8x128xf32>
    %c0_1 = arith.constant 0 : index
    %c0_2 = arith.constant 0 : index
    %1 = vector.load %arg3[%c0_1, %c0_2] : memref<128x128xf32, #tpu.memory_space<vmem>>, vector<128x128xf32>
    %cst = arith.constant dense<0.000000e+00> : vector<8x128xf32>
    %2 = tpu.matmul %0, %1, %cst {dimension_numbers = #tpu.dot_dimension_numbers<[1], [0], [0], [1], [0, 0, 1, 1], [], []>} : vector<8x128xf32>, vector<128x128xf32>, vector<8x128xf32> -> vector<8x128xf32>
    %3 = arith.mulf %0, %0 : vector<8x128xf32>
    %cst_3 = arith.constant dense<0.000000e+00> : vector<8xf32>
    %4 = vector.multi_reduction <add>, %3, %cst_3 [1] : vector<8x128xf32> to vector<8xf32>
    %5 = vector.shape_cast %4 : vector<8xf32> to vector<8x1xf32>
    %c0_4 = arith.constant 0 : index
    %c0_5 = arith.constant 0 : index
    %6 = vector.load %arg4[%c0_4, %c0_5] : memref<1x128xf32, #tpu.memory_space<vmem>>, vector<1x128xf32>
    %7 = vector.broadcast %5 : vector<8x1xf32> to vector<8x128xf32>
    %8 = vector.broadcast %6 : vector<1x128xf32> to vector<8x128xf32>
    %9 = arith.addf %7, %8 : vector<8x128xf32>
    %10 = arith.subf %9, %2 : vector<8x128xf32>
    %cst_6 = arith.constant 0.000000e+00 : f32
    %11 = vector.broadcast %cst_6 : f32 to vector<8x128xf32>
    %12 = arith.maximumf %10, %11 : vector<8x128xf32>
    %13 = math.sqrt %12 : vector<8x128xf32>
    %14 = tpu.iota {dimensions = array<i32: 1>} : vector<1x128xi32>
    %c8_i32 = arith.constant 8 : i32
    %15 = vector.broadcast %c8_i32 : i32 to vector<1x128xi32>
    %16 = arith.cmpi slt, %14, %15 : vector<1x128xi32>
    %17 = vector.extract_strided_slice %13 {offsets = [0, 0], sizes = [8, 1], strides = [1, 1]} : vector<8x128xf32> to vector<8x1xf32>
    %18 = vector.shape_cast %16 : vector<1x128xi1> to vector<1x128xi1>
    %19 = vector.broadcast %18 : vector<1x128xi1> to vector<8x128xi1>
    %20 = vector.shape_cast %17 : vector<8x1xf32> to vector<8x1xf32>
    %21 = vector.broadcast %20 : vector<8x1xf32> to vector<8x128xf32>
    %22 = arith.select %19, %13, %21 : vector<8x128xi1>, vector<8x128xf32>
    %cst_7 = arith.constant dense<0x7F800000> : vector<8xf32>
    %23 = vector.multi_reduction <minimumf>, %22, %cst_7 [1] : vector<8x128xf32> to vector<8xf32>
    %24 = vector.shape_cast %23 : vector<8xf32> to vector<8x1xf32>
    %cst_8 = arith.constant dense<0xFF800000> : vector<8xf32>
    %25 = vector.multi_reduction <maximumf>, %22, %cst_8 [1] : vector<8x128xf32> to vector<8xf32>
    %26 = vector.shape_cast %25 : vector<8xf32> to vector<8x1xf32>
    %27 = arith.subf %26, %24 : vector<8x1xf32>
    %cst_9 = arith.constant 1.000000e+00 : f32
    %28 = vector.broadcast %cst_9 : f32 to vector<8x1xf32>
    %29 = arith.divf %28, %27 : vector<8x1xf32>
    %30 = vector.broadcast %26 : vector<8x1xf32> to vector<8x128xf32>
    %31 = arith.subf %30, %13 : vector<8x128xf32>
    %32 = vector.broadcast %29 : vector<8x1xf32> to vector<8x128xf32>
    %33 = arith.mulf %31, %32 : vector<8x128xf32>
    %cst_10 = arith.constant 9.99999996E-13 : f32
    %34 = vector.broadcast %cst_10 : f32 to vector<8x128xf32>
    %35 = arith.maximumf %33, %34 : vector<8x128xf32>
    %c0_11 = arith.constant 0 : index
    %36 = memref.load %arg1[%c0_11] : memref<3xf32, #tpu.memory_space<smem>>
    %c1 = arith.constant 1 : index
    %37 = memref.load %arg1[%c1] : memref<3xf32, #tpu.memory_space<smem>>
    %c2 = arith.constant 2 : index
    %38 = memref.load %arg1[%c2] : memref<3xf32, #tpu.memory_space<smem>>
    %39 = vector.broadcast %37 : f32 to vector<8x128xf32>
    %40 = arith.cmpf ole, %35, %39 : vector<8x128xf32>
    %41 = vector.broadcast %37 : f32 to vector<8x128xf32>
    %42 = arith.subf %41, %35 : vector<8x128xf32>
    %43 = vector.broadcast %36 : f32 to vector<8x128xf32>
    %44 = arith.mulf %43, %42 : vector<8x128xf32>
    %45 = math.log %35 : vector<8x128xf32>
    %46 = vector.broadcast %38 : f32 to vector<8x128xf32>
    %47 = arith.subf %45, %46 : vector<8x128xf32>
    %48 = arith.mulf %44, %47 : vector<8x128xf32>
    %cst_12 = arith.constant 0.000000e+00 : f32
    %49 = vector.broadcast %cst_12 : f32 to vector<8x128xf32>
    %50 = arith.select %40, %48, %49 : vector<8x128xi1>, vector<8x128xf32>
    %51 = arith.subf %50, %13 : vector<8x128xf32>
    %c0_13 = arith.constant 0 : index
    %c0_14 = arith.constant 0 : index
    %52 = vector.load %arg5[%c0_13, %c0_14] : memref<8x128xf32, #tpu.memory_space<vmem>>, vector<8x128xf32>
    tpu.vector_store %arg5[%c0_13, %c0_14], %51 {strides = array<i32>} : memref<8x128xf32, #tpu.memory_space<vmem>>, vector<8x128xf32>,
    return
  }
  func.func @transform_0(%arg0: i32) -> i32 {
    %c0_i32 = arith.constant 0 : i32
    %c0_i32_0 = arith.constant 0 : i32
    return %c0_i32 : i32
  }
  func.func @transform_1(%arg0: i32) -> (i32, i32) {
    %c0_i32 = arith.constant 0 : i32
    %c0_i32_0 = arith.constant 0 : i32
    return %arg0, %c0_i32 : i32, i32
  }
  func.func @transform_2(%arg0: i32) -> (i32, i32) {
    %c0_i32 = arith.constant 0 : i32
    %c0_i32_0 = arith.constant 0 : i32
    %c0_i32_1 = arith.constant 0 : i32
    return %c0_i32, %c0_i32_0 : i32, i32
  }
  func.func @transform_3(%arg0: i32) -> (i32, i32) {
    %c0_i32 = arith.constant 0 : i32
    %c0_i32_0 = arith.constant 0 : i32
    %c0_i32_1 = arith.constant 0 : i32
    return %c0_i32, %c0_i32_0 : i32, i32
  }
  func.func @transform_4(%arg0: i32) -> (i32, i32) {
    %c0_i32 = arith.constant 0 : i32
    %c0_i32_0 = arith.constant 0 : i32
    return %arg0, %c0_i32 : i32, i32
  }
}

</mosaic_0001>

<bundles_post_ra>
// kernel: soft_knn_mask.1
= control target key start
LH: loop header
LB: loop body
LE: loop exit
PB: predicated region body
PF: predicated region fallthrough
CT: control target
= control target key end

     0   :  { %9 = vsyncpa [#allocation3], 0  ;;  %s567_s15 = smov 0   ;;  %s664_s0 = inlined_call_operand.vmem [shape: f32[3], index: 0, kind: input, shape index: {}]   ;;  %s665_s1 = inlined_call_operand.vmem [shape: f32[16,128], index: 1, kind: input, shape index: {}]   ;;  %s666_s2 = inlined_call_operand.vmem [shape: f32[128,128], index: 2, kind: input, shape index: {}]   ;;  %s667_s3 = inlined_call_operand.vmem [shape: f32[1,128], index: 3, kind: input, shape index: {}]   ;;  %s668_s4 = inlined_call_operand.vmem [shape: f32[16,128], index: 4, kind: output, shape index: {}]  }
   0x1 LB: > { %s573_s16 = sadd.s32 4294967295, %s536_s15   ;;  %p418_p0 = scmp.ge.s32.totalorder %s536_s15, 1  ;;  %s536_s15 = sphi %s567_s15, %s15_s15  }
   0x2   : > { %p135_p1 = scmp.lt.s32.totalorder %s536_s15, 3  ;;  %s148_s19 = sshll.u32 %s664_s0, 4  ;;  %s149_s19 = int_to_ptr.vmem [resolvable:$true] %s148_s19 }
   0x3   : > { %p490_p3 = scmp.eq.s32.totalorder %s573_s16, 0  ;;  %s511_s21 = scalar_lea.vmem %s149_s19, 16 }
   0x4   : > { %p580_p2 = pnand %p418_p0, %p135_p1  ;;  %p512_p6 = scmp.ne.s32.totalorder %s149_s19, %s511_s21 }
   0x5   : > { %p519_p10 = scmp.lt.s32.totalorder %s149_s19, %s149_s19  ;;  %p520_p11 = scmp.lt.s32.totalorder %s511_s21, %s511_s21 }
   0x6   : > { %p486_p4 = pneg %p580_p2 }
   0x7   : > { %p521_p12 = por %p520_p11, %p519_p10 }
   0x8   : > { %p487_p5 = pnand %p490_p3, %p486_p4 }
   0xa   : > { %p513_p7 = pneg %p487_p5 }
   0xc   : > { %p514_p8 = pnand %p513_p7, %p512_p6 }
   0xe   : > { %p515_p9 = pneg %p514_p8 }
  0x10   : > { %p522_p13 = pnand %p521_p12, %p515_p9 }
  0x12   : > { %525 = shalt.err (!%p522_p13)
}
  0x13   : > { %s538_s22 = smov [#allocation2]   ;;  %174 = sbr.rel (%p580_p2) target bundleno = 586 (0x24a), region = 36 }
  0x14   : > { %489 = dma.vmem_to_smem (!%p487_p5), %s149_s19, 16, %s538_s22, [#allocation3]  }
  0x18   : > { %531 = dma.done.wait (%p490_p3), [#allocation3], 16  }
  0x19   : > { %533 = vsyncadd (%p490_p3), [#allocation3], 4294967280 }
  0x1a   : > { %180 = sfence }
  0x1b   : > { %v223_v0 = vld [vmem:[%s666_s2 + $0x78] sm:$0xff]  ;;  %p199_p0 = scmp.lt.s32.totalorder %s573_s16, 1  ;;  %v539_v1 = vmov 0.0   ;;  %v222_v2 = vld [vmem:[%s666_s2 + $0x70] sm:$0xff]  ;;  %vm540_vm0 = vmmov 0   ;;  %v221_v3 = vld [vmem:[%s666_s2 + $0x68] sm:$0xff]  ;;  %v314_v32 = vlaneseq }
  0x1c   : > { %447 = vmatprep.subr.mxu0 %v539_v1  ;;  %479 = vmatprep.mubr.msk.f32.mxu0 %vm540_vm0, %v539_v1  ;;  %v220_v4 = vld [vmem:[%s666_s2 + $0x60] sm:$0xff]  ;;  %v219_v6 = vld [vmem:[%s666_s2 + $0x58] sm:$0xff]  ;;  %v218_v8 = vld [vmem:[%s666_s2 + $0x50] sm:$0xff]  ;;  %v541_v19 = vmov 0   ;;  %s426_s12 = sld [smem:[#allocation2 + $0x1]] }
  0x1d   : > { %448 = vmatpush3.msra.mxu0 %v223_v0  ;;  %s671_s16 = smov (!%p199_p0, %s573_s16), 1  ;;  %v217_v9 = vld [vmem:[%s666_s2 + $0x48] sm:$0xff]  ;;  %v216_v10 = vld [vmem:[%s666_s2 + $0x40] sm:$0xff]  ;;  %v215_v11 = vld [vmem:[%s666_s2 + $0x38] sm:$0xff]  ;;  %504 = vset.pattern.permute.xlu0 %v541_v19  ;;  %v315_v33 = vand.u32 127, %v314_v32  ;;  %s335_s13 = sld [smem:[#allocation2]] }
  0x1e   : > { %449 = vmatprep.subr.mxu0 %v539_v1  ;;  %s423_s29 = sshll.u32 %s671_s16, 3  ;;  %v214_v12 = vld [vmem:[%s666_s2 + $0x30] sm:$0xff]  ;;  %v213_v13 = vld [vmem:[%s666_s2 + $0x28] sm:$0xff]  ;;  %v212_v14 = vld [vmem:[%s666_s2 + $0x20] sm:$0xff]  ;;  %s427_s14 = sld [smem:[#allocation2 + $0x2]] }
  0x1f   : > { %450 = vmatpush3.msra.mxu0 %v222_v2  ;;  %s202_s8 = scalar_lea.vmem %s665_s1, %s423_s29  ;;  %v211_v15 = vld [vmem:[%s666_s2 + $0x18] sm:$0xff]  ;;  %v210_v16 = vld [vmem:[%s666_s2 + $0x10] sm:$0xff]  ;;  %v209_v17 = vld [vmem:[%s666_s2 + $0x8] sm:$0xff]  ;;  %vm316_vm3 = vcmp.lt.s32.totalorder %v315_v33, 8  ;;  %s206_s19 = scalar_lea.vmem %s668_s4, %s423_s29 }
  0x20   : > { %451 = vmatprep.subr.mxu0 %v539_v1  ;;  %v207_v5 = vld [vmem:[%s202_s8] sm:$0xff] }
  0x21   : > { %452 = vmatpush3.msra.mxu0 %v221_v3  ;;  %v294_v7 = vmul.f32 %v207_v5, %v207_v5  ;;  %v208_v18 = vld [vmem:[%s666_s2] sm:$0xff] }
  0x22   : > { %453 = vmatprep.subr.mxu0 %v539_v1  ;;  %v425_v20 = vld [vmem:[%s667_s3] ss:$0 sm:$0xff]  ;;  %v338_v43 = vstv %s426_s12 }
  0x23   : > { %454 = vmatpush3.msra.mxu0 %v220_v4  ;;  %295 = vadd.xlane.f32.xlu0 %v294_v7  ;;  %v341_v46 = vstv %s335_s13 }
  0x24   : > { %455 = vmatprep.subr.mxu0 %v539_v1  ;;  %v345_v47 = vstv %s427_s14 }
  0x25   : > { %456 = vmatpush3.msra.mxu0 %v219_v6 }
  0x26   : > { %457 = vmatprep.subr.mxu0 %v539_v1 }
  0x27   : > { %458 = vmatpush3.msra.mxu0 %v218_v8 }
  0x28   : > { %459 = vmatprep.subr.mxu0 %v539_v1 }
  0x29   : > { %460 = vmatpush3.msra.mxu0 %v217_v9 }
  0x2a   : > { %461 = vmatprep.subr.mxu0 %v539_v1 }
  0x2b   : > { %462 = vmatpush3.msra.mxu0 %v216_v10 }
  0x2c   : > { %463 = vmatprep.subr.mxu0 %v539_v1 }
  0x2d   : > { %464 = vmatpush3.msra.mxu0 %v215_v11 }
  0x2e   : > { %465 = vmatprep.subr.mxu0 %v539_v1 }
  0x2f   : > { %466 = vmatpush3.msra.mxu0 %v214_v12 }
  0x30   : > { %467 = vmatprep.subr.mxu0 %v539_v1 }
  0x31   : > { %468 = vmatpush3.msra.mxu0 %v213_v13 }
  0x32   : > { %469 = vmatprep.subr.mxu0 %v539_v1 }
  0x33   : > { %470 = vmatpush3.msra.mxu0 %v212_v14 }
  0x34   : > { %471 = vmatprep.subr.mxu0 %v539_v1 }
  0x35   : > { %472 = vmatpush3.msra.mxu0 %v211_v15 }
  0x36   : > { %473 = vmatprep.subr.mxu0 %v539_v1 }
  0x37   : > { %474 = vmatpush3.msra.mxu0 %v210_v16 }
  0x38   : > { %475 = vmatprep.subr.mxu0 %v539_v1 }
  0x39   : > { %476 = vmatpush3.msra.mxu0 %v209_v17 }
  0x3a   : > { %477 = vmatprep.subr.mxu0 %v539_v1 }
  0x3b   : > { %478 = vmatpush3.msra.mxu0 %v208_v18 }
  0x3c   : > { %480 = vmatmul.mubr.f32.vlgmr.msra.gmra.mxu0 %v207_v5 }
  0xac   : > { %v296_v21 = vpop.xlane.xlu0 %295 }
  0xad   : > { %v304_v22 = vadd.f32 %v425_v20, %v296_v21 }
  0xfc   : > { %v290_v23 = vpop.f32.mrf.mxu0 }
  0xfd   : > { %v305_v24 = vsub.f32 %v304_v22, %v290_v23 }
  0xfe   : > { %v481_v25 = vpop.f32.mrf.mxu0 }
  0xff   : > { %v306_v26 = vmax.f32 %v305_v24, 0.0 }
 0x101   : > { %505 = vrsqrt.f32 %v306_v26  ;;  %vm309_vm1 = vcmp.eq.f32.partialorder %v306_v26, inf  ;;  %v312_v29 = vand.u32 2147483648, %v306_v26  ;;  %vm311_vm2 = vcmp.eq.f32.partialorder %v306_v26, 0.0 }
 0x10e   : > { %v506_v27 = vpop.eup %505 }
 0x10f   : > { %v308_v28 = vmul.f32 %v506_v27, %v306_v26 }
 0x111   : > { %v310_v30 = vsel %vm309_vm1, %v306_v26, %v308_v28 }
 0x112   : > { %v313_v31 = vsel %vm311_vm2, %v312_v29, %v310_v30 }
 0x113   : > { %321 = vperm.xlu0 %504, %v313_v31  }
 0x18e   : > { %v322_v34 = vpop.permute.xlu0 %321 }
 0x18f   : > { %v324_v35 = vsel %vm316_vm3, %v313_v31, %v322_v34 }
 0x190   : > { %325 = vmin.xlane.f32.xlu1 %v324_v35 }
 0x194   : > { %327 = vmax.xlane.f32.xlu1 %v324_v35 }
 0x219   : > { %v326_v36 = vpop.xlane.xlu1 %325 }
 0x21d   : > { %v328_v37 = vpop.xlane.xlu1 %327 }
 0x21e   : > { %v329_v38 = vsub.f32 %v328_v37, %v326_v36  ;;  %v332_v39 = vsub.f32 %v328_v37, %v313_v31 }
 0x220   : > { %507 = vrcp.f32 %v329_v38 }
 0x22d   : > { %v508_v40 = vpop.eup %507 }
 0x22e   : > { %v333_v41 = vmul.f32 %v508_v40, %v332_v39 }
 0x230   : > { %v334_v42 = vmax.f32 %v333_v41, 1e-12 }
 0x232   : > { %509 = vlog2.f32 %v334_v42  ;;  %v340_v44 = vsub.f32 %v338_v43, %v334_v42  ;;  %vm339_vm4 = vcmp.le.f32.partialorder %v334_v42, %v338_v43 }
 0x234   : > { %v342_v49 = vmul.f32 %v341_v46, %v340_v44 }
 0x23f   : > { %v510_v45 = vpop.eup %509 }
 0x240   : > { %v344_v48 = vmul.f32 0.6931472, %v510_v45 }
 0x242   : > { %v346_v50 = vsub.f32 %v344_v48, %v345_v47 }
 0x244   : > { %v347_v51 = vmul.f32 %v346_v50, %v342_v49 }
 0x246   : > { %v348_v52 = vsel %vm339_vm4, %v347_v51, 0.0 }
 0x247   : > { %v349_v53 = vsub.f32 %v348_v52, %v313_v31 }
 0x249   : > { %350 = vst [vmem:[%s206_s19] sm:$0xff] %v349_v53 }
 0x24a PF: > { %s15_s15 = sadd.s32 1, %s536_s15  }
 0x24b   : > { %p12_p1 = scmp.ge.s32.totalorder %s15_s15, 4  }
 0x24d   :  { %14 = sbr.rel (!%p12_p1) target bundleno = 1 (0x1), region = 71 }
 0x252   :  { %370 = vsyncpa [#allocation3], 1 }
 0x253   :  { %372 = vsyncpa [#allocation3 + $0x1], 1 }

</bundles_post_ra>
